<compile_context>
chip_gen: v7x
topology: tpu7x:2x2x1
jax: 0.10.0
libtpu: 0.0.40
codegen_flags: <defaults>
</compile_context>

<pallas_src>
import math
import functools

import jax
import jax.numpy as jnp
from jax import lax
from jax.experimental import pallas as pl
from jax.experimental.pallas import tpu as pltpu


# --------------------------------------------------------------------------
# tiling helper
# --------------------------------------------------------------------------

def _pick_tile(dim, target, base):
    """Largest tile <= target that is a multiple of `base` and divides `dim`;
    falls back to an 8-multiple, then to the full dimension (valid for
    BlockSpec when equal to the array dim)."""
    if dim <= target:
        return dim
    bases = (base,) if base == 8 else (base, 8)
    for b in bases:
        t = (target // b) * b
        while t >= b:
            if dim % t == 0:
                return t
            t -= b
    return dim


def _row_tile(M, D, *, vmem_budget_bytes=2 << 20):
    """Row tile for row-wise fused kernels: keep a (tm, D) f32 tile within
    ~2 MB so 2-3 double-buffered operands stay well under v7x scoped VMEM."""
    target = max(8, min(512, vmem_budget_bytes // (4 * max(D, 1))))
    base = 128 if M >= 128 else 8
    return _pick_tile(M, target, base)


# --------------------------------------------------------------------------
# Tiled matmul + bias (+ optional ReLU)  -- QKV proj, FFN first matmul, LM head
# --------------------------------------------------------------------------

def _matmul_bias_kernel(x_ref, w_ref, b_ref, o_ref, acc_ref, *, activation):
    k = pl.program_id(2)

    @pl.when(k == 0)
    def _():
        acc_ref[...] = jnp.zeros_like(acc_ref)

    # bf16 MXU operands, f32 accumulation.
    acc_ref[...] += jnp.dot(x_ref[...].astype(jnp.bfloat16),
                            w_ref[...].astype(jnp.bfloat16),
                            preferred_element_type=jnp.float32)

    @pl.when(k == pl.num_programs(2) - 1)
    def _():
        y = acc_ref[...] + b_ref[...]
        if activation == "relu":
            y = jnp.maximum(y, 0.0)
        o_ref[...] = y.astype(o_ref.dtype)


def linear(x2d, w, b, *, activation=None,
           tm_target=256, tn_target=256, tk_target=512):
    M, K = x2d.shape
    N = w.shape[1]
    tm = _pick_tile(M, tm_target, 128 if M >= 128 else 8)
    tn = _pick_tile(N, tn_target, 128)
    tk = _pick_tile(K, tk_target, 128)
    grid = (M // tm, N // tn, K // tk)
    cost = pl.CostEstimate(
        flops=2 * M * K * N,
        transcendentals=0,
        bytes_accessed=4 * (M * K + K * N + M * N + N),
    )
    kernel = functools.partial(_matmul_bias_kernel, activation=activation)
    # TODO(synk): on v5e consider pipeline_mode=pl.Buffered(3) on the weight
    #             BlockSpec to hide the k-streamed weight DMA behind compute.
    return pl.pallas_call(
        kernel,
        out_shape=jax.ShapeDtypeStruct((M, N), jnp.float32),
        grid=grid,
        in_specs=[
            pl.BlockSpec((tm, tk), lambda i, j, k: (i, k)),
            pl.BlockSpec((tk, tn), lambda i, j, k: (k, j)),
            pl.BlockSpec((1, tn), lambda i, j, k: (0, j)),
        ],
        out_specs=pl.BlockSpec((tm, tn), lambda i, j, k: (i, j)),
        scratch_shapes=[pltpu.VMEM((tm, tn), jnp.float32)],
        compiler_params=pltpu.CompilerParams(
            dimension_semantics=("parallel", "parallel", "arbitrary")),
        cost_estimate=cost,
    )(x2d, w, b.reshape(1, N))


# --------------------------------------------------------------------------
# K-tiled (matmul + bias + residual + LayerNorm) epilogue kernel.
# Used for the attention output projection and the FFN second matmul, so the
# weight is streamed over K and only a (tm, D) f32 accumulator stays resident.
# --------------------------------------------------------------------------

def _matmul_res_ln_kernel(x_ref, w_ref, b_ref, r_ref, g_ref, be_ref,
                          o_ref, acc_ref):
    k = pl.program_id(1)

    @pl.when(k == 0)
    def _():
        acc_ref[...] = jnp.zeros_like(acc_ref)

    acc_ref[...] += jnp.dot(x_ref[...].astype(jnp.bfloat16),
                            w_ref[...].astype(jnp.bfloat16),
                            preferred_element_type=jnp.float32)

    @pl.when(k == pl.num_programs(1) - 1)
    def _():
        z = acc_ref[...] + b_ref[...] + r_ref[...]
        # one-pass LayerNorm statistics (sum & sum-of-squares)
        mu = jnp.mean(z, axis=-1, keepdims=True)
        ms = jnp.mean(z * z, axis=-1, keepdims=True)
        var = ms - mu * mu
        o_ref[...] = ((z - mu) * lax.rsqrt(var + 1e-5) * g_ref[...]
                      + be_ref[...]).astype(o_ref.dtype)


def matmul_residual_ln(x2d, w, b, resid2d, gamma, beta, *,
                       tm_target=256, tk_target=512):
    M, K = x2d.shape
    D = w.shape[1]
    tm = _pick_tile(M, tm_target, 128 if M >= 128 else 8)
    tk = _pick_tile(K, tk_target, 128)
    grid = (M // tm, K // tk)
    cost = pl.CostEstimate(
        flops=2 * M * K * D + 10 * M * D,
        transcendentals=0,
        bytes_accessed=4 * (M * K + K * D + 3 * M * D + 3 * D),
    )
    return pl.pallas_call(
        _matmul_res_ln_kernel,
        out_shape=jax.ShapeDtypeStruct((M, D), jnp.float32),
        grid=grid,
        in_specs=[
            pl.BlockSpec((tm, tk), lambda i, k: (i, k)),
            pl.BlockSpec((tk, D), lambda i, k: (k, 0)),
            pl.BlockSpec((1, D), lambda i, k: (0, 0)),
            pl.BlockSpec((tm, D), lambda i, k: (i, 0)),
            pl.BlockSpec((1, D), lambda i, k: (0, 0)),
            pl.BlockSpec((1, D), lambda i, k: (0, 0)),
        ],
        out_specs=pl.BlockSpec((tm, D), lambda i, k: (i, 0)),
        scratch_shapes=[pltpu.VMEM((tm, D), jnp.float32)],
        compiler_params=pltpu.CompilerParams(
            dimension_semantics=("parallel", "arbitrary")),
        cost_estimate=cost,
    )(x2d, w, b.reshape(1, D), resid2d,
      gamma.reshape(1, D), beta.reshape(1, D))


# --------------------------------------------------------------------------
# Fused (add + LayerNorm), row-tiled -- used for the PE add + first LayerNorm
# --------------------------------------------------------------------------

def _add_ln_kernel(x_ref, r_ref, g_ref, b_ref, o_ref):
    x = x_ref[...] + r_ref[...]
    mu = jnp.mean(x, axis=-1, keepdims=True)
    ms = jnp.mean(x * x, axis=-1, keepdims=True)
    var = ms - mu * mu
    o_ref[...] = ((x - mu) * lax.rsqrt(var + 1e-5) * g_ref[...]
                  + b_ref[...]).astype(o_ref.dtype)


def add_layernorm(x2d, r2d, gamma, beta):
    M, D = x2d.shape
    tm = _row_tile(M, D)
    return pl.pallas_call(
        _add_ln_kernel,
        out_shape=jax.ShapeDtypeStruct((M, D), jnp.float32),
        grid=(M // tm,),
        in_specs=[
            pl.BlockSpec((tm, D), lambda i: (i, 0)),
            pl.BlockSpec((tm, D), lambda i: (i, 0)),
            pl.BlockSpec((1, D), lambda i: (0, 0)),
            pl.BlockSpec((1, D), lambda i: (0, 0)),
        ],
        out_specs=pl.BlockSpec((tm, D), lambda i: (i, 0)),
        compiler_params=pltpu.CompilerParams(dimension_semantics=("parallel",)),
    )(x2d, r2d, gamma.reshape(1, D), beta.reshape(1, D))


# --------------------------------------------------------------------------
# Masked multi-head attention: grid=(B, H), one head per block.
# q/k/v arrive as (B, H, S, Dh) (wrapper layout plumbing), output is a single
# lane-dense (S, Dh) store per block.  No unrolled per-head loop, no concat.
# --------------------------------------------------------------------------

def _attention_kernel(mask_ref, q_ref, k_ref, v_ref, o_ref, *, scale):
    q = q_ref[0, 0] * scale                        # (S, Dh), scale folded into q
    k = k_ref[0, 0]
    v = v_ref[0, 0]
    S = q.shape[0]

    row = lax.broadcasted_iota(jnp.int32, (S, S), 0)   # query index
    col = lax.broadcasted_iota(jnp.int32, (S, S), 1)   # key index
    causal = col <= row
    pad = mask_ref[...] > 0.5                      # (1, S) key-padding mask
    allowed = jnp.logical_and(causal, pad)

    # q @ k.T without an explicit transpose (contract over Dh), bf16 on MXU.
    s = lax.dot_general(q.astype(jnp.bfloat16), k.astype(jnp.bfloat16),
                        dimension_numbers=(((1,), (1,)), ((), ())),
                        preferred_element_type=jnp.float32)       # (S, S)
    s = jnp.where(allowed, s, -1e9)
    s = s - jnp.max(s, axis=-1, keepdims=True)
    p = jnp.exp(s)
    l = jnp.sum(p, axis=-1, keepdims=True)
    o = jnp.dot(p.astype(jnp.bfloat16), v.astype(jnp.bfloat16),
                preferred_element_type=jnp.float32) / l
    o_ref[0, 0] = o.astype(o_ref.dtype)


def mha_attention(qkv2d, mask_f, B, S, D, n_heads):
    # qkv2d: (B*S, 3D) with [q | k | v] concatenated on the last axis.
    Dh = D // n_heads
    # Wrapper-side layout plumbing: (B*S, 3D) -> (3, B, H, S, Dh)
    qkv = qkv2d.reshape(B, S, 3, n_heads, Dh).transpose(2, 0, 3, 1, 4)
    q, k, v = qkv[0], qkv[1], qkv[2]

    # TODO(synk): for long S, switch to flash-style KV tiling (grid over
    #             (B, H, q_tile, kv_tile) with online-softmax m/l/acc scratch)
    #             instead of materializing the (S, S) score matrix per head.
    kernel = functools.partial(_attention_kernel, scale=1.0 / math.sqrt(Dh))
    out = pl.pallas_call(
        kernel,
        out_shape=jax.ShapeDtypeStruct((B, n_heads, S, Dh), jnp.float32),
        grid=(B, n_heads),
        in_specs=[
            pl.BlockSpec((1, S), lambda b, h: (b, 0)),
            pl.BlockSpec((1, 1, S, Dh), lambda b, h: (b, h, 0, 0)),
            pl.BlockSpec((1, 1, S, Dh), lambda b, h: (b, h, 0, 0)),
            pl.BlockSpec((1, 1, S, Dh), lambda b, h: (b, h, 0, 0)),
        ],
        out_specs=pl.BlockSpec((1, 1, S, Dh), lambda b, h: (b, h, 0, 0)),
        compiler_params=pltpu.CompilerParams(
            dimension_semantics=("parallel", "parallel")),
    )(mask_f, q, k, v)
    # (B, H, S, Dh) -> (B*S, D)
    return out.transpose(0, 2, 1, 3).reshape(B * S, D)


# --------------------------------------------------------------------------
# Parameter construction (deterministic, synthetic)
# --------------------------------------------------------------------------

def init_params(key, vocab, max_seq, d, n_layers, n_heads, d_ff):
    def nrm(k, shape, scale=0.02):
        return scale * jax.random.normal(k, shape, dtype=jnp.float32)

    keys = jax.random.split(key, 3 + n_layers)
    params = {
        "tok_emb": nrm(keys[0], (vocab, d)),
        "ln0_g": jnp.ones((d,), jnp.float32),
        "ln0_b": jnp.zeros((d,), jnp.float32),
        "lm_w": nrm(keys[1], (d, vocab)),
        "lm_b": jnp.zeros((vocab,), jnp.float32),
        "layers": [],
    }
    for li in range(n_layers):
        lk = jax.random.split(keys[3 + li], 8)
        params["layers"].append({
            # fused QKV weight: [wq | wk | wv] along the output axis
            "wqkv": nrm(lk[0], (d, 3 * d)),
            "bqkv": jnp.zeros((3 * d,), jnp.float32),
            "wo": nrm(lk[3], (d, d)), "bo": jnp.zeros((d,), jnp.float32),
            "w1": nrm(lk[4], (d, d_ff)), "b1": jnp.zeros((d_ff,), jnp.float32),
            "w2": nrm(lk[5], (d_ff, d)), "b2": jnp.zeros((d,), jnp.float32),
            "ln1_g": jnp.ones((d,), jnp.float32), "ln1_b": jnp.zeros((d,), jnp.float32),
            "ln2_g": jnp.ones((d,), jnp.float32), "ln2_b": jnp.zeros((d,), jnp.float32),
        })
    return params


def sinusoidal_pe(max_seq, d):
    pos = jnp.arange(max_seq, dtype=jnp.float32)[:, None]
    i = jnp.arange(0, d, 2, dtype=jnp.float32)[None, :]
    div = jnp.exp(-i * math.log(10000.0) / d)
    pe = jnp.zeros((max_seq, d), jnp.float32)
    pe = pe.at[:, 0::2].set(jnp.sin(pos * div))
    pe = pe.at[:, 1::2].set(jnp.cos(pos * div))
    return pe


# --------------------------------------------------------------------------
# Forward pass (token-id gather + head split/merge are XLA glue;
# all matmul / softmax / LayerNorm work is Pallas).  Dropout = identity (eval).
# --------------------------------------------------------------------------

def language_model_forward(params, pe_table, x_tokens, mask, n_heads):
    B, S = x_tokens.shape
    D = params["tok_emb"].shape[1]
    M = B * S
    assert S <= pe_table.shape[0], "sequence longer than max_sequence_length"

    # token embedding (gather) + fused (PE add + LayerNorm)
    tok = jnp.take(params["tok_emb"], x_tokens, axis=0)            # (B, S, D)
    pe = jnp.broadcast_to(pe_table[:S][None], (B, S, D))
    h = add_layernorm(tok.reshape(M, D), pe.reshape(M, D),
                      params["ln0_g"], params["ln0_b"])            # (M, D)

    mask_f = mask.astype(jnp.float32)                              # (B, S)

    # TODO(synk): activations are carried in f32 between pallas_calls; carrying
    #             them in bf16 would halve HBM traffic on the row-wise kernels.
    for lp in params["layers"]:
        qkv = linear(h, lp["wqkv"], lp["bqkv"])                    # (M, 3D)
        attn = mha_attention(qkv, mask_f, B, S, D, n_heads)        # (M, D)
        h1 = matmul_residual_ln(attn, lp["wo"], lp["bo"],
                                h, lp["ln1_g"], lp["ln1_b"])       # (M, D)
        ffn_h = linear(h1, lp["w1"], lp["b1"], activation="relu")  # (M, F)
        h = matmul_residual_ln(ffn_h, lp["w2"], lp["b2"],
                               h1, lp["ln2_g"], lp["ln2_b"])       # (M, D)

    logits = linear(h, params["lm_w"], params["lm_b"], tn_target=512)  # (M, V)
    V = params["lm_w"].shape[1]
    return logits.reshape(B, S, V)


# --------------------------------------------------------------------------
# Pure-JAX reference (for correctness checking)
# --------------------------------------------------------------------------

def reference_forward(params, pe_table, x_tokens, mask, n_heads):
    B, S = x_tokens.shape
    D = params["tok_emb"].shape[1]
    Dh = D // n_heads

    def ln(x, g, b):
        mu = jnp.mean(x, -1, keepdims=True)
        var = jnp.mean((x - mu) ** 2, -1, keepdims=True)
        return (x - mu) * lax.rsqrt(var + 1e-5) * g + b

    h = jnp.take(params["tok_emb"], x_tokens, axis=0) + pe_table[:S][None]
    h = ln(h, params["ln0_g"], params["ln0_b"])
    mask_f = mask.astype(jnp.float32)
    causal = jnp.tril(jnp.ones((S, S), bool))
    for lp in params["layers"]:
        wq, wk, wv = lp["wqkv"][:, :D], lp["wqkv"][:, D:2 * D], lp["wqkv"][:, 2 * D:]
        bq, bk, bv = lp["bqkv"][:D], lp["bqkv"][D:2 * D], lp["bqkv"][2 * D:]
        q = (h @ wq + bq).reshape(B, S, n_heads, Dh).transpose(0, 2, 1, 3)
        k = (h @ wk + bk).reshape(B, S, n_heads, Dh).transpose(0, 2, 1, 3)
        v = (h @ wv + bv).reshape(B, S, n_heads, Dh).transpose(0, 2, 1, 3)
        sc = jnp.einsum("bhqd,bhkd->bhqk", q, k) / math.sqrt(Dh)
        allowed = causal[None, None] & (mask_f[:, None, None, :] > 0.5)
        sc = jnp.where(allowed, sc, -1e9)
        p = jax.nn.softmax(sc, axis=-1)
        a = jnp.einsum("bhqk,bhkd->bhqd", p, v).transpose(0, 2, 1, 3).reshape(B, S, D)
        a = a @ lp["wo"] + lp["bo"]
        h1 = ln(h + a, lp["ln1_g"], lp["ln1_b"])
        ff = jnp.maximum(h1 @ lp["w1"] + lp["b1"], 0.0) @ lp["w2"] + lp["b2"]
        h = ln(h1 + ff, lp["ln2_g"], lp["ln2_b"])
    return h @ params["lm_w"] + params["lm_b"]


# --------------------------------------------------------------------------

if __name__ == "__main__":
    # small shapes consistent with the module
    B, S, D, H, L, V, FF = 2, 8, 32, 4, 2, 64, 128
    MAX_SEQ = 16

    key = jax.random.PRNGKey(0)
    kp, kx = jax.random.split(key)
    params = init_params(kp, V, MAX_SEQ, D, L, H, FF)
    pe_table = sinusoidal_pe(MAX_SEQ, D)

    x_tokens = jax.random.randint(kx, (B, S), 0, V, dtype=jnp.int32)
    mask = jnp.ones((B, S), dtype=jnp.int32)          # 1 = valid token, 0 = pad
    mask = mask.at[1, 6:].set(0)                      # pad tail of second sequence

    fwd = functools.partial(language_model_forward, n_heads=H)
    out = fwd(params, pe_table, x_tokens, mask)
    out = jax.block_until_ready(out)

    ref = reference_forward(params, pe_table, x_tokens, mask, H)
    assert out.shape == (B, S, V), out.shape
    # tolerance accounts for bf16 MXU operands vs the f32 reference
    assert jnp.allclose(out, ref, rtol=2e-2, atol=2e-2), (
        "mismatch vs reference: max abs diff = %f" % float(jnp.max(jnp.abs(out - ref))))

    print("KERNEL_OK")
</pallas_src>

<mosaic_0001>
module attributes {stable_mosaic.version = 11 : i64} {
  func.func @_add_ln_kernel(%arg0: i32, %arg1: memref<16x32xf32, #tpu.memory_space<vmem>>, %arg2: memref<16x32xf32, #tpu.memory_space<vmem>>, %arg3: memref<1x32xf32, #tpu.memory_space<vmem>>, %arg4: memref<1x32xf32, #tpu.memory_space<vmem>>, %arg5: memref<16x32xf32, #tpu.memory_space<vmem>>) attributes {dimension_semantics = [#tpu.dimension_semantics<parallel>], iteration_bounds = array<i64: 1>, scalar_prefetch = 0 : i64, scratch_operands = 0 : i64, tpu.core_type = #tpu.core_type<tc>, window_params = [{transform_indices = @transform_0, window_bounds = array<i64: 16, 32>}, {transform_indices = @transform_1, window_bounds = array<i64: 16, 32>}, {pipeline_mode = #tpu.pipeline_mode<synchronous>, transform_indices = @transform_2, window_bounds = array<i64: 1, 32>}, {pipeline_mode = #tpu.pipeline_mode<synchronous>, transform_indices = @transform_3, window_bounds = array<i64: 1, 32>}, {transform_indices = @transform_4, window_bounds = array<i64: 16, 32>}]} {
    %c0 = arith.constant 0 : index
    %c0_0 = arith.constant 0 : index
    %0 = vector.load %arg1[%c0, %c0_0] : memref<16x32xf32, #tpu.memory_space<vmem>>, vector<16x32xf32>
    %c0_1 = arith.constant 0 : index
    %c0_2 = arith.constant 0 : index
    %1 = vector.load %arg2[%c0_1, %c0_2] : memref<16x32xf32, #tpu.memory_space<vmem>>, vector<16x32xf32>
    %2 = arith.addf %0, %1 : vector<16x32xf32>
    %cst = arith.constant dense<0.000000e+00> : vector<16xf32>
    %3 = vector.multi_reduction <add>, %2, %cst [1] : vector<16x32xf32> to vector<16xf32>
    %4 = vector.shape_cast %3 : vector<16xf32> to vector<16x1xf32>
    %cst_3 = arith.constant 3.200000e+01 : f32
    %5 = vector.broadcast %cst_3 : f32 to vector<16x1xf32>
    %6 = arith.divf %4, %5 : vector<16x1xf32>
    %7 = arith.mulf %2, %2 : vector<16x32xf32>
    %cst_4 = arith.constant dense<0.000000e+00> : vector<16xf32>
    %8 = vector.multi_reduction <add>, %7, %cst_4 [1] : vector<16x32xf32> to vector<16xf32>
    %9 = vector.shape_cast %8 : vector<16xf32> to vector<16x1xf32>
    %cst_5 = arith.constant 3.200000e+01 : f32
    %10 = vector.broadcast %cst_5 : f32 to vector<16x1xf32>
    %11 = arith.divf %9, %10 : vector<16x1xf32>
    %12 = arith.mulf %6, %6 : vector<16x1xf32>
    %13 = arith.subf %11, %12 : vector<16x1xf32>
    %14 = vector.broadcast %6 : vector<16x1xf32> to vector<16x32xf32>
    %15 = arith.subf %2, %14 : vector<16x32xf32>
    %cst_6 = arith.constant 9.99999974E-6 : f32
    %16 = vector.broadcast %cst_6 : f32 to vector<16x1xf32>
    %17 = arith.addf %13, %16 : vector<16x1xf32>
    %18 = math.rsqrt %17 : vector<16x1xf32>
    %19 = vector.broadcast %18 : vector<16x1xf32> to vector<16x32xf32>
    %20 = arith.mulf %15, %19 : vector<16x32xf32>
    %c0_7 = arith.constant 0 : index
    %c0_8 = arith.constant 0 : index
    %21 = vector.load %arg3[%c0_7, %c0_8] : memref<1x32xf32, #tpu.memory_space<vmem>>, vector<1x32xf32>
    %22 = vector.broadcast %21 : vector<1x32xf32> to vector<16x32xf32>
    %23 = arith.mulf %20, %22 : vector<16x32xf32>
    %c0_9 = arith.constant 0 : index
    %c0_10 = arith.constant 0 : index
    %24 = vector.load %arg4[%c0_9, %c0_10] : memref<1x32xf32, #tpu.memory_space<vmem>>, vector<1x32xf32>
    %25 = vector.broadcast %24 : vector<1x32xf32> to vector<16x32xf32>
    %26 = arith.addf %23, %25 : vector<16x32xf32>
    %c0_11 = arith.constant 0 : index
    %c0_12 = arith.constant 0 : index
    %27 = vector.load %arg5[%c0_11, %c0_12] : memref<16x32xf32, #tpu.memory_space<vmem>>, vector<16x32xf32>
    tpu.vector_store %arg5[%c0_11, %c0_12], %26 {strides = array<i32>} : memref<16x32xf32, #tpu.memory_space<vmem>>, vector<16x32xf32>,
    return
  }
  func.func @transform_0(%arg0: i32) -> (i32, i32) {
    %c0_i32 = arith.constant 0 : i32
    %c0_i32_0 = arith.constant 0 : i32
    return %arg0, %c0_i32 : i32, i32
  }
  func.func @transform_1(%arg0: i32) -> (i32, i32) {
    %c0_i32 = arith.constant 0 : i32
    %c0_i32_0 = arith.constant 0 : i32
    return %arg0, %c0_i32 : i32, i32
  }
  func.func @transform_2(%arg0: i32) -> (i32, i32) {
    %c0_i32 = arith.constant 0 : i32
    %c0_i32_0 = arith.constant 0 : i32
    %c0_i32_1 = arith.constant 0 : i32
    return %c0_i32, %c0_i32_0 : i32, i32
  }
  func.func @transform_3(%arg0: i32) -> (i32, i32) {
    %c0_i32 = arith.constant 0 : i32
    %c0_i32_0 = arith.constant 0 : i32
    %c0_i32_1 = arith.constant 0 : i32
    return %c0_i32, %c0_i32_0 : i32, i32
  }
  func.func @transform_4(%arg0: i32) -> (i32, i32) {
    %c0_i32 = arith.constant 0 : i32
    %c0_i32_0 = arith.constant 0 : i32
    return %arg0, %c0_i32 : i32, i32
  }
}

</mosaic_0001>

<bundles_post_ra>
// kernel: tpu_custom_call.1
= control target key start
LH: loop header
LB: loop body
LE: loop exit
PB: predicated region body
PF: predicated region fallthrough
CT: control target
= control target key end

     0   :  { %9 = vsyncpa [#allocation3], 0  ;;  %s292_s0 = inlined_call_operand.hbm [shape: f32[16,32], index: 0, kind: input, shape index: {}]   ;;  %s293_s1 = inlined_call_operand.hbm [shape: f32[16,32], index: 1, kind: input, shape index: {}]   ;;  %s294_s2 = inlined_call_operand.vmem [shape: f32[1,32], index: 2, kind: input, shape index: {}]   ;;  %s295_s3 = inlined_call_operand.vmem [shape: f32[1,32], index: 3, kind: input, shape index: {}]   ;;  %s296_s4 = inlined_call_operand.hbm [shape: f32[16,32], index: 4, kind: output, shape index: {}]  }
   0x1   :  { %10 = vsyncpa [#allocation6], 0 }
   0x2   :  { %11 = vsyncpa [#allocation4], 0  ;;  %s205_s15 = smov [#allocation2]   ;;  %s133_s19 = scalar_lea.hbm %s292_s0, 256 }
   0x3   :  { %s17_s16 = sshll.u32 %s205_s15, 4  ;;  %p134_p0 = scmp.ne.s32.totalorder %s292_s0, %s133_s19  ;;  %s18_s16 = int_to_ptr.vmem [resolvable:$true] %s17_s16 }
   0x4   :  { %p137_p1 = scmp.lt.u32.totalorder %s133_s19, %s292_s0 }
   0x6   :  { %p139_p2 = pnand %p137_p1, %p134_p0 }
   0x8   :  { %142 = shalt.err (!%p139_p2)
}
   0x9   :  { %s143_s24 = scalar_lea.vmem %s18_s16, 256  ;;  %p148_p4 = scmp.lt.s32.totalorder %s18_s16, %s18_s16 }
   0xa   :  { %p144_p3 = scmp.ne.s32.totalorder %s18_s16, %s143_s24  ;;  %p149_p5 = scmp.lt.s32.totalorder %s143_s24, %s143_s24 }
   0xc   :  { %p150_p6 = por %p149_p5, %p148_p4 }
   0xe   :  { %p151_p7 = pnand %p150_p6, %p144_p3 }
  0x10   :  { %154 = shalt.err (!%p151_p7)
}
  0x11   :  { %s206_s25 = smov 128   ;;  %s207_s26 = smov 8  }
  0x12   :  { %23 = dma.hbm_to_vmem [thread:$0]  %s292_s0, 256, %s18_s16, [#allocation3], %s206_s25, %s206_s25, %s207_s26  }
  0x13   :  { %s208_s29 = smov [#allocation5]   ;;  %s155_s7 = scalar_lea.hbm %s293_s1, 256 }
  0x14   :  { %s29_s30 = sshll.u32 %s208_s29, 4  ;;  %p156_p8 = scmp.ne.s32.totalorder %s293_s1, %s155_s7  ;;  %s30_s30 = int_to_ptr.vmem [resolvable:$true] %s29_s30 }
  0x15   :  { %p159_p9 = scmp.lt.u32.totalorder %s155_s7, %s293_s1 }
  0x17   :  { %p161_p10 = pnand %p159_p9, %p156_p8 }
  0x19   :  { %164 = shalt.err (!%p161_p10)
}
  0x1a   :  { %s165_s12 = scalar_lea.vmem %s30_s30, 256  ;;  %p170_p12 = scmp.lt.s32.totalorder %s30_s30, %s30_s30 }
  0x1b   :  { %p166_p11 = scmp.ne.s32.totalorder %s30_s30, %s165_s12  ;;  %p171_p13 = scmp.lt.s32.totalorder %s165_s12, %s165_s12 }
  0x1d   :  { %p172_p0 = por %p171_p13, %p170_p12 }
  0x1f   :  { %p173_p1 = pnand %p172_p0, %p166_p11 }
  0x21   :  { %176 = shalt.err (!%p173_p1)
}
  0x22   :  { %35 = dma.hbm_to_vmem [thread:$0]  %s293_s1, 256, %s30_s30, [#allocation6], %s206_s25, %s206_s25, %s207_s26  }
  0x23   :  { %199 = dma.done.wait [#allocation3], 256  }
  0x24   :  { %200 = vsyncadd [#allocation3], 4294967040 }
  0x25   :  { %201 = dma.done.wait [#allocation6], 256  }
  0x26   :  { %202 = vsyncadd [#allocation6], 4294967040  ;;  %v46_v0 = vld [vmem:[#allocation2] sm:$0xff]  ;;  %v48_v1 = vld [vmem:[#allocation5] sm:$0xff]  ;;  %vm52_vm0 = vcmask 261120   ;;  %s209_s17 = smov [#allocation7]  }
  0x27   :  { %v47_v2 = vld [vmem:[#allocation2 + $0x8] sm:$0xff]  ;;  %v50_v3 = vadd.f32 %v48_v1, %v46_v0  ;;  %v49_v4 = vld [vmem:[#allocation5 + $0x8] sm:$0xff]  ;;  %v122_v28 = vld [vmem:[%s294_s2] ss:$0 sm:$0xff]  ;;  %s109_s18 = sshll.u32 %s209_s17, 4  ;;  %s110_s18 = int_to_ptr.vmem [resolvable:$true] %s109_s18 }
  0x28   :  { %v51_v5 = vadd.f32 %v49_v4, %v47_v2  ;;  %v123_v30 = vld [vmem:[%s295_s3] ss:$0 sm:$0xff]  ;;  %s177_s2 = scalar_lea.vmem %s110_s18, 256  ;;  %p182_p3 = scmp.lt.s32.totalorder %s110_s18, %s110_s18 }
  0x29   :  { %v53_v6 = vsel %vm52_vm0, %v50_v3, 0.0  ;;  %v62_v7 = vmul.f32 %v50_v3, %v50_v3  ;;  %p178_p2 = scmp.ne.s32.totalorder %s110_s18, %s177_s2  ;;  %p183_p4 = scmp.lt.s32.totalorder %s177_s2, %s177_s2 }
  0x2a   :  { %54 = vadd.xlane.f32.xlu0 %v53_v6  ;;  %v63_v8 = vmul.f32 %v51_v5, %v51_v5  ;;  %v56_v10 = vsel %vm52_vm0, %v51_v5, 0.0 }
  0x2b   :  { %v64_v9 = vsel %vm52_vm0, %v62_v7, 0.0  ;;  %p184_p5 = por %p183_p4, %p182_p3 }
  0x2c   :  { %65 = vadd.xlane.f32.xlu1 %v64_v9  ;;  %v67_v11 = vsel %vm52_vm0, %v63_v8, 0.0 }
  0x2d   :  { %p185_p6 = pnand %p184_p5, %p178_p2 }
  0x2e   :  { %57 = vadd.xlane.f32.xlu0 %v56_v10 }
  0x30   :  { %68 = vadd.xlane.f32.xlu1 %v67_v11 }
  0xb7   :  { %v55_v12 = vpop.xlane.xlu0 %54 }
  0xb8   :  { %v60_v13 = vmul.f32 0.03125, %v55_v12 }
  0xb9   :  { %v66_v14 = vpop.xlane.xlu1 %65 }
  0xba   :  { %v72_v15 = vmul.f32 %v60_v13, %v60_v13  ;;  %v70_v16 = vmul.f32 0.03125, %v66_v14  ;;  %v76_v26 = vsub.f32 %v50_v3, %v60_v13 }
  0xbb   :  { %v58_v17 = vpop.xlane.xlu0 %57 }
  0xbc   :  { %v74_v18 = vsub.f32 %v70_v16, %v72_v15  ;;  %v61_v19 = vmul.f32 0.03125, %v58_v17 }
  0xbd   :  { %v69_v20 = vpop.xlane.xlu1 %68 }
  0xbe   :  { %v78_v21 = vadd.f32 1e-05, %v74_v18  ;;  %v73_v22 = vmul.f32 %v61_v19, %v61_v19  ;;  %v71_v23 = vmul.f32 0.03125, %v69_v20  ;;  %v77_v31 = vsub.f32 %v51_v5, %v61_v19 }
  0xc0   :  { %129 = vrsqrt.f32 %v78_v21  ;;  %v75_v24 = vsub.f32 %v71_v23, %v73_v22 }
  0xc2   :  { %v79_v25 = vadd.f32 1e-05, %v75_v24 }
  0xc4   :  { %131 = vrsqrt.f32 %v79_v25 }
  0xca   :  { %v130_v27 = vpop.eup %129 }
  0xcb   :  { %v82_v29 = vmul.f32 %v130_v27, %v76_v26 }
  0xcd   :  { %v91_v32 = vmul.f32 %v122_v28, %v82_v29 }
  0xce   :  { %v132_v33 = vpop.eup %131 }
  0xcf   :  { %v83_v34 = vmul.f32 %v132_v33, %v77_v31  ;;  %v100_v35 = vadd.f32 %v123_v30, %v91_v32 }
  0xd1   :  { %v92_v36 = vmul.f32 %v122_v28, %v83_v34  ;;  %102 = vst.msk [vmem:[#allocation7] sm:$0xff] %vm52_vm0, %v100_v35 }
  0xd3   :  { %v101_v37 = vadd.f32 %v123_v30, %v92_v36 }
  0xd5   :  { %103 = vst.msk [vmem:[#allocation7 + $0x8] sm:$0xff] %vm52_vm0, %v101_v37 }
  0xd6   :  { %188 = shalt.err (!%p185_p6)
}
  0xd7   :  { %s189_s20 = scalar_lea.hbm %s296_s4, 256 }
  0xd8   :  { %p190_p7 = scmp.ne.s32.totalorder %s296_s4, %s189_s20  ;;  %p193_p8 = scmp.lt.u32.totalorder %s189_s20, %s296_s4 }
  0xda   :  { %p195_p9 = pnand %p193_p8, %p190_p7 }
  0xdc   :  { %198 = shalt.err (!%p195_p9)
}
  0xdd   :  { %115 = dma.vmem_to_hbm [thread:$0]  %s110_s18, 256, %s296_s4, [#allocation4], %s206_s25, %s206_s25, %s207_s26  }
  0xde   :  { %203 = dma.done.wait [#allocation4], 256  }
  0xdf   :  { %204 = vsyncadd [#allocation4], 4294967040 }
  0xe0   :  { %119 = vsyncpa [#allocation3], 1 }
  0xe1   :  { %120 = vsyncpa [#allocation6], 1 }
  0xe2   :  { %121 = vsyncpa [#allocation4], 1 }

</bundles_post_ra>
